<compile_context>
chip_gen: v6e
topology: v6e:2x2x1
jax: 0.10.0
libtpu: 0.0.40
codegen_flags: <defaults>
</compile_context>

<pallas_src>
import functools

import jax
import jax.numpy as jnp
from jax.experimental import pallas as pl
from jax.experimental.pallas import tpu as pltpu


# ----------------------------- helpers -----------------------------

def _round_up(x, m):
    return (x + m - 1) // m * m


def _pad2(a, rows, cols, dtype):
    r, c = a.shape
    return jnp.pad(a.astype(dtype), ((0, rows - r), (0, cols - c)))


def _vmem_capacity_bytes():
    """Physical VMEM of the current generation (conservative fallback)."""
    try:
        info = pltpu.get_tpu_info()
        for attr in ("vmem_capacity_bytes", "vmem_size_bytes", "vmem_bytes"):
            v = getattr(info, attr, None)
            if v:
                return int(v)
    except Exception:
        pass
    return 64 * 1024 * 1024  # v7x per-core VMEM (smallest current generation)


def _pick_row_tile(n_pad, vmem_cap, multi_block):
    """Largest row tile dividing n_pad; generation-aware upper candidate."""
    cands = (1024, 512, 256, 128) if vmem_cap >= (100 << 20) else (512, 256, 128)
    # For the row-parallel path, keep >= 2 blocks so v7x megacore can shard.
    limit = n_pad // 2 if (multi_block and n_pad >= 256) else n_pad
    for t in cands:
        if t <= limit and n_pad % t == 0:
            return t
    return 128


def _fused_fits(n_pad, h_pad, o2_pad, tile, vmem_limit):
    """Rough VMEM footprint of the fused kernel (double-buffered blocks)."""
    need = (2 * tile * n_pad * 2          # A row block (bf16)
            + 2 * n_pad * h_pad * 2       # XW resident (bf16)
            + 2 * h_pad * o2_pad * 2      # Wcat resident (bf16)
            + n_pad * o2_pad * 2          # HW VMEM scratch (bf16)
            + 2 * tile * o2_pad * 4       # out block (f32)
            + 4 * 8 * (h_pad + o2_pad))   # b1/gamma/beta + bcat (padded)
    return need <= int(vmem_limit * 0.7)


# ----------------------------- kernel bodies -----------------------------

def _layer1_rows(a_blk, xw, aff, wcat, hidden_real):
    """HW rows (f32) = LayerNorm(ReLU(a_blk @ XW + b1)) @ Wcat.

    a_blk: (tile, n_pad) bf16, xw: (n_pad, h_pad) bf16, aff: (3, h_pad) f32
    holding [b1; gamma; beta], wcat: (h_pad, o2_pad) bf16.
    """
    h = jnp.dot(a_blk, xw, preferred_element_type=jnp.float32)
    h = h + aff[0:1, :]                    # + b1
    h = jnp.maximum(h, 0.0)                # ReLU

    # LayerNorm over the REAL hidden lanes only (padded lanes are exactly 0).
    hp = h.shape[-1]
    lane = jax.lax.broadcasted_iota(jnp.int32, (1, hp), 1)
    mask = (lane < hidden_real).astype(jnp.float32)
    inv_h = 1.0 / float(hidden_real)

    mean = jnp.sum(h, axis=-1, keepdims=True) * inv_h
    centered = (h - mean) * mask
    var = jnp.sum(centered * centered, axis=-1, keepdims=True) * inv_h
    hn = centered * jax.lax.rsqrt(var + 1e-5)
    hn = hn * aff[1:2, :] + aff[2:3, :]    # gamma / beta (padded lanes -> 0)

    # Project straight to the fused [mu | logvar] head: HW = H @ Wcat.
    return jnp.dot(hn.astype(jnp.bfloat16), wcat,
                   preferred_element_type=jnp.float32)


def _fused_kernel(a_ref, xw_ref, aff_ref, wcat_ref, bcat_ref, out_ref, hw_scr,
                  *, tile, hidden_real):
    """grid = (pass, row_block).  pass 0: HW rows -> VMEM scratch.
    pass 1: [mu|logvar] rows = A_rows @ HW + bcat."""
    p = pl.program_id(0)
    i = pl.program_id(1)

    @pl.when(p == 0)
    def _layer1():
        hw = _layer1_rows(a_ref[...], xw_ref[...], aff_ref[...], wcat_ref[...],
                          hidden_real)
        hw_scr[i] = hw.astype(hw_scr.dtype)

    @pl.when(p == 1)
    def _layer2():
        n_blocks = hw_scr.shape[0]
        acc = jnp.zeros((a_ref.shape[0], hw_scr.shape[2]), jnp.float32)
        for b in range(n_blocks):          # static unroll over HW row blocks
            acc = acc + jnp.dot(a_ref[:, b * tile:(b + 1) * tile], hw_scr[b],
                                preferred_element_type=jnp.float32)
        out_ref[...] = (acc + bcat_ref[...]).astype(out_ref.dtype)


def _l1_kernel(a_ref, xw_ref, aff_ref, wcat_ref, hw_ref, *, hidden_real):
    """Two-pass path, layer 1: HW rows to HBM."""
    hw = _layer1_rows(a_ref[...], xw_ref[...], aff_ref[...], wcat_ref[...],
                      hidden_real)
    hw_ref[...] = hw.astype(hw_ref.dtype)


def _l2_kernel(a_ref, hw_ref, bcat_ref, out_ref):
    """Two-pass path, layer 2: [mu|logvar] rows = A_rows @ HW + bcat."""
    out = jnp.dot(a_ref[...], hw_ref[...], preferred_element_type=jnp.float32)
    out_ref[...] = (out + bcat_ref[...]).astype(out_ref.dtype)


# ----------------------------- pallas_call wrappers -----------------------------

def _call_fused(a_p, xw_p, aff_p, wcat_p, bcat_p, *, n_pad, h_pad, o2_pad,
                h_dim, tile, vmem_limit):
    n_blocks = n_pad // tile
    cost = pl.CostEstimate(
        flops=2 * (n_pad * n_pad * h_pad + n_pad * h_pad * o2_pad
                   + n_pad * n_pad * o2_pad),
        transcendentals=n_pad,
        bytes_accessed=(2 * 2 * n_pad * n_pad                 # A read twice (bf16)
                        + 2 * (n_pad * h_pad + h_pad * o2_pad)
                        + 4 * (n_pad * o2_pad + 3 * h_pad + o2_pad)),
    )
    return pl.pallas_call(
        functools.partial(_fused_kernel, tile=tile, hidden_real=h_dim),
        out_shape=jax.ShapeDtypeStruct((n_pad, o2_pad), jnp.float32),
        grid_spec=pltpu.PrefetchScalarGridSpec(
            num_scalar_prefetch=0,
            grid=(2, n_blocks),
            in_specs=[
                pl.BlockSpec((tile, n_pad), lambda p, i: (i, 0)),     # A rows
                pl.BlockSpec((n_pad, h_pad), lambda p, i: (0, 0)),    # XW
                pl.BlockSpec((3, h_pad), lambda p, i: (0, 0)),        # b1/g/b
                pl.BlockSpec((h_pad, o2_pad), lambda p, i: (0, 0)),   # Wcat
                pl.BlockSpec((1, o2_pad), lambda p, i: (0, 0)),       # bcat
            ],
            # Block index i*p: stays 0 (resident, never written back) through
            # pass 0, becomes the real row block in pass 1.
            out_specs=pl.BlockSpec((tile, o2_pad), lambda p, i: (i * p, 0)),
            scratch_shapes=[pltpu.VMEM((n_blocks, tile, o2_pad), jnp.bfloat16)],
        ),
        # Row blocks share the HW scratch across passes -> keep them on one TC.
        compiler_params=pltpu.CompilerParams(
            dimension_semantics=("arbitrary", "arbitrary"),
            vmem_limit_bytes=vmem_limit,
        ),
        cost_estimate=cost,
    )(a_p, xw_p, aff_p, wcat_p, bcat_p)


def _call_two_pass(a_p, xw_p, aff_p, wcat_p, bcat_p, *, n_pad, h_pad, o2_pad,
                   h_dim, tile, vmem_limit):
    grid = (n_pad // tile,)
    cparams = pltpu.CompilerParams(
        dimension_semantics=("parallel",), vmem_limit_bytes=vmem_limit)

    cost1 = pl.CostEstimate(
        flops=2 * (n_pad * n_pad * h_pad + n_pad * h_pad * o2_pad),
        transcendentals=n_pad,
        bytes_accessed=2 * (n_pad * n_pad + n_pad * h_pad + h_pad * o2_pad
                            + n_pad * o2_pad) + 4 * 3 * h_pad,
    )
    # TODO(synk): store HW in f32 for training-grade precision of the logvar/KL path.
    hw = pl.pallas_call(
        functools.partial(_l1_kernel, hidden_real=h_dim),
        out_shape=jax.ShapeDtypeStruct((n_pad, o2_pad), jnp.bfloat16),
        grid_spec=pltpu.PrefetchScalarGridSpec(
            num_scalar_prefetch=0, grid=grid,
            in_specs=[
                pl.BlockSpec((tile, n_pad), lambda i: (i, 0)),    # A rows
                pl.BlockSpec((n_pad, h_pad), lambda i: (0, 0)),   # XW
                pl.BlockSpec((3, h_pad), lambda i: (0, 0)),       # b1/g/b
                pl.BlockSpec((h_pad, o2_pad), lambda i: (0, 0)),  # Wcat
            ],
            out_specs=pl.BlockSpec((tile, o2_pad), lambda i: (i, 0)),
        ),
        compiler_params=cparams,
        cost_estimate=cost1,
    )(a_p, xw_p, aff_p, wcat_p)

    cost2 = pl.CostEstimate(
        flops=2 * n_pad * n_pad * o2_pad,
        transcendentals=0,
        bytes_accessed=(2 * (n_pad * n_pad + n_pad * o2_pad)
                        + 4 * (n_pad * o2_pad + o2_pad)),
    )
    return pl.pallas_call(
        _l2_kernel,
        out_shape=jax.ShapeDtypeStruct((n_pad, o2_pad), jnp.float32),
        grid_spec=pltpu.PrefetchScalarGridSpec(
            num_scalar_prefetch=0, grid=grid,
            in_specs=[
                pl.BlockSpec((tile, n_pad), lambda i: (i, 0)),    # A rows
                pl.BlockSpec((n_pad, o2_pad), lambda i: (0, 0)),  # HW
                pl.BlockSpec((1, o2_pad), lambda i: (0, 0)),      # bcat
            ],
            out_specs=pl.BlockSpec((tile, o2_pad), lambda i: (i, 0)),
        ),
        compiler_params=cparams,
        cost_estimate=cost2,
    )(a_p, hw, bcat_p)


# ----------------------------- top-level encoder -----------------------------

@functools.partial(jax.jit, static_argnames=("force_two_pass",))
def vgae_encoder(adj_norm, x, params, force_two_pass=False):
    n = x.shape[0]
    h_dim = params["w1"].shape[1]
    o = params["wmu"].shape[1]
    o2 = 2 * o

    n_pad = _round_up(n, 128)
    h_pad = _round_up(h_dim, 128)
    o2_pad = _round_up(o2, 128)

    vmem_cap = _vmem_capacity_bytes()
    vmem_limit = min(int(vmem_cap * 3 // 4), 100 * 1024 * 1024)

    # Flip ordering: precompute XW = X @ W1 once (f32), kernels stream A @ XW.
    xw = jnp.dot(x.astype(jnp.float32), params["w1"].astype(jnp.float32))

    a_p = _pad2(adj_norm, n_pad, n_pad, jnp.bfloat16)
    xw_p = _pad2(xw, n_pad, h_pad, jnp.bfloat16)
    aff = jnp.concatenate([params["b1"], params["gamma"], params["beta"]], 0)
    aff_p = _pad2(aff, 3, h_pad, jnp.float32)

    wcat = jnp.concatenate([params["wmu"], params["wlv"]], axis=1)   # (H, 2O)
    bcat = jnp.concatenate([params["bmu"], params["blv"]], axis=1)   # (1, 2O)
    wcat_p = _pad2(wcat, h_pad, o2_pad, jnp.bfloat16)
    bcat_p = _pad2(bcat, 1, o2_pad, jnp.float32)

    tile_fused = _pick_row_tile(n_pad, vmem_cap, multi_block=False)
    tile_split = _pick_row_tile(n_pad, vmem_cap, multi_block=True)

    use_fused = (not force_two_pass) and _fused_fits(
        n_pad, h_pad, o2_pad, tile_fused, vmem_limit)

    kwargs = dict(n_pad=n_pad, h_pad=h_pad, o2_pad=o2_pad, h_dim=h_dim,
                  vmem_limit=vmem_limit)
    if use_fused:
        out_pad = _call_fused(a_p, xw_p, aff_p, wcat_p, bcat_p,
                              tile=tile_fused, **kwargs)
    else:
        out_pad = _call_two_pass(a_p, xw_p, aff_p, wcat_p, bcat_p,
                                 tile=tile_split, **kwargs)

    mu = out_pad[:n, :o]
    logvar = out_pad[:n, o:o2]
    return mu, logvar


# ----------------------------- plain-JAX glue -----------------------------

def gcn_norm_dense_adj(edge_index, num_nodes):
    """Dense A_hat = D^-1/2 (A + I) D^-1/2 from an edge_index of shape (2, E)."""
    src, dst = edge_index
    adj = jnp.zeros((num_nodes, num_nodes), jnp.float32)
    adj = adj.at[dst, src].set(1.0)                         # messages src -> dst
    # Force the diagonal to 1 (adds missing self-loops, never double-counts
    # ones already present in edge_index; matches PyG add_remaining_self_loops).
    adj = jnp.maximum(adj, jnp.eye(num_nodes, dtype=jnp.float32))
    deg = jnp.sum(adj, axis=1)
    d_inv_sqrt = jnp.where(deg > 0, 1.0 / jnp.sqrt(deg), 0.0)
    return adj * d_inv_sqrt[:, None] * d_inv_sqrt[None, :]


def glorot(key, shape):
    fan_in, fan_out = shape
    limit = jnp.sqrt(6.0 / (fan_in + fan_out))
    return jax.random.uniform(key, shape, jnp.float32, -limit, limit)


def init_params(key, num_features, hidden_channels, out_channels):
    k1, k2, k3 = jax.random.split(key, 3)
    return {
        "w1": glorot(k1, (num_features, hidden_channels)),
        "b1": jnp.zeros((1, hidden_channels), jnp.float32),
        "gamma": jnp.ones((1, hidden_channels), jnp.float32),
        "beta": jnp.zeros((1, hidden_channels), jnp.float32),
        "wmu": glorot(k2, (hidden_channels, out_channels)),
        "bmu": jnp.zeros((1, out_channels), jnp.float32),
        "wlv": glorot(k3, (hidden_channels, out_channels)),
        "blv": jnp.zeros((1, out_channels), jnp.float32),
    }


# ----------------------------- reference (pure f32 JAX) -----------------------------

def vgae_encoder_ref(adj_norm, x, p):
    h = adj_norm @ (x @ p["w1"]) + p["b1"]
    h = jnp.maximum(h, 0.0)
    mean = jnp.mean(h, axis=-1, keepdims=True)
    var = jnp.mean((h - mean) ** 2, axis=-1, keepdims=True)
    h = (h - mean) / jnp.sqrt(var + 1e-5) * p["gamma"] + p["beta"]
    mu = adj_norm @ (h @ p["wmu"]) + p["bmu"]
    lv = adj_norm @ (h @ p["wlv"]) + p["blv"]
    return mu, lv


# ----------------------------- main -----------------------------

if __name__ == "__main__":
    num_nodes = 8
    num_features = 16
    hidden_channels = 32
    out_channels = 16

    key = jax.random.PRNGKey(0)
    kx, kp = jax.random.split(key)

    x = jax.random.normal(kx, (num_nodes, num_features), jnp.float32)

    # small deterministic ring graph (undirected -> both directions listed)
    src = jnp.arange(num_nodes, dtype=jnp.int32)
    dst = (src + 1) % num_nodes
    edge_index = jnp.stack(
        [jnp.concatenate([src, dst]), jnp.concatenate([dst, src])], axis=0
    )

    adj_norm = gcn_norm_dense_adj(edge_index, num_nodes)
    params = init_params(kp, num_features, hidden_channels, out_channels)

    mu_ref, lv_ref = vgae_encoder_ref(adj_norm, x, params)

    # Tolerance reflects bf16 matmul operands (A, XW, H, HW) with f32
    # accumulation and f32 LayerNorm, vs. the pure-f32 reference.
    ATOL = RTOL = 5e-2

    # Fused single-kernel path (auto-selected at this size).
    mu, lv = vgae_encoder(adj_norm, x, params)
    jax.block_until_ready((mu, lv))
    assert mu.shape == (num_nodes, out_channels)
    assert lv.shape == (num_nodes, out_channels)
    assert jnp.allclose(mu, mu_ref, atol=ATOL, rtol=RTOL), \
        float(jnp.max(jnp.abs(mu - mu_ref)))
    assert jnp.allclose(lv, lv_ref, atol=ATOL, rtol=RTOL), \
        float(jnp.max(jnp.abs(lv - lv_ref)))

    # Two-call row-parallel path (large-graph fallback), exercised explicitly.
    mu2, lv2 = vgae_encoder(adj_norm, x, params, force_two_pass=True)
    jax.block_until_ready((mu2, lv2))
    assert jnp.allclose(mu2, mu_ref, atol=ATOL, rtol=RTOL), \
        float(jnp.max(jnp.abs(mu2 - mu_ref)))
    assert jnp.allclose(lv2, lv_ref, atol=ATOL, rtol=RTOL), \
        float(jnp.max(jnp.abs(lv2 - lv_ref)))

    print("KERNEL_OK")
</pallas_src>

<mosaic_0001>
module attributes {stable_mosaic.version = 11 : i64} {
  func.func @_fused_kernel(%arg0: i32, %arg1: i32, %arg2: memref<128x128xbf16, #tpu.memory_space<vmem>>, %arg3: memref<128x128xbf16, #tpu.memory_space<vmem>>, %arg4: memref<3x128xf32, #tpu.memory_space<vmem>>, %arg5: memref<128x128xbf16, #tpu.memory_space<vmem>>, %arg6: memref<1x128xf32, #tpu.memory_space<vmem>>, %arg7: memref<128x128xf32, #tpu.memory_space<vmem>>, %arg8: memref<1x128x128xbf16, #tpu.memory_space<vmem>>) attributes {dimension_semantics = [#tpu.dimension_semantics<arbitrary>, #tpu.dimension_semantics<arbitrary>], iteration_bounds = array<i64: 2, 1>, scalar_prefetch = 0 : i64, scratch_operands = 1 : i64, tpu.core_type = #tpu.core_type<tc>, window_params = [{transform_indices = @transform_0, window_bounds = array<i64: 128, 128>}, {pipeline_mode = #tpu.pipeline_mode<synchronous>, transform_indices = @transform_1, window_bounds = array<i64: 128, 128>}, {pipeline_mode = #tpu.pipeline_mode<synchronous>, transform_indices = @transform_2, window_bounds = array<i64: 3, 128>}, {pipeline_mode = #tpu.pipeline_mode<synchronous>, transform_indices = @transform_3, window_bounds = array<i64: 128, 128>}, {pipeline_mode = #tpu.pipeline_mode<synchronous>, transform_indices = @transform_4, window_bounds = array<i64: 1, 128>}, {transform_indices = @transform_5, window_bounds = array<i64: 128, 128>}]} {
    %c0_i32 = arith.constant 0 : i32
    %0 = arith.cmpi eq, %arg0, %c0_i32 : i32
    %1 = arith.extui %0 : i1 to i32
    %c0_i32_0 = arith.constant 0 : i32
    %2 = arith.cmpi ne, %1, %c0_i32_0 : i32
    scf.if %2 {
      %c0 = arith.constant 0 : index
      %c0_2 = arith.constant 0 : index
      %6 = vector.load %arg2[%c0, %c0_2] : memref<128x128xbf16, #tpu.memory_space<vmem>>, vector<128x128xbf16>
      %c0_3 = arith.constant 0 : index
      %c0_4 = arith.constant 0 : index
      %7 = vector.load %arg3[%c0_3, %c0_4] : memref<128x128xbf16, #tpu.memory_space<vmem>>, vector<128x128xbf16>
      %c0_5 = arith.constant 0 : index
      %c0_6 = arith.constant 0 : index
      %8 = vector.load %arg4[%c0_5, %c0_6] : memref<3x128xf32, #tpu.memory_space<vmem>>, vector<3x128xf32>
      %c0_7 = arith.constant 0 : index
      %c0_8 = arith.constant 0 : index
      %9 = vector.load %arg5[%c0_7, %c0_8] : memref<128x128xbf16, #tpu.memory_space<vmem>>, vector<128x128xbf16>
      %cst = arith.constant dense<0.000000e+00> : vector<128x128xf32>
      %10 = tpu.matmul %6, %7, %cst {dimension_numbers = #tpu.dot_dimension_numbers<[1], [0], [0], [1], [0, 0, 1, 1], [], []>} : vector<128x128xbf16>, vector<128x128xbf16>, vector<128x128xf32> -> vector<128x128xf32>
      %11 = vector.extract_strided_slice %8 {offsets = [0, 0], sizes = [1, 128], strides = [1, 1]} : vector<3x128xf32> to vector<1x128xf32>
      %12 = vector.broadcast %11 : vector<1x128xf32> to vector<128x128xf32>
      %13 = arith.addf %10, %12 : vector<128x128xf32>
      %cst_9 = arith.constant 0.000000e+00 : f32
      %14 = vector.broadcast %cst_9 : f32 to vector<128x128xf32>
      %15 = arith.maximumf %13, %14 : vector<128x128xf32>
      %16 = tpu.iota {dimensions = array<i32: 1>} : vector<1x128xi32>
      %c32_i32 = arith.constant 32 : i32
      %17 = vector.broadcast %c32_i32 : i32 to vector<1x128xi32>
      %18 = arith.cmpi slt, %16, %17 : vector<1x128xi32>
      %19 = arith.extui %18 : vector<1x128xi1> to vector<1x128xi32>
      %20 = arith.sitofp %19 : vector<1x128xi32> to vector<1x128xf32>
      %cst_10 = arith.constant dense<0.000000e+00> : vector<128xf32>
      %21 = vector.multi_reduction <add>, %15, %cst_10 [1] : vector<128x128xf32> to vector<128xf32>
      %22 = vector.shape_cast %21 : vector<128xf32> to vector<128x1xf32>
      %cst_11 = arith.constant 3.125000e-02 : f32
      %23 = vector.broadcast %cst_11 : f32 to vector<128x1xf32>
      %24 = arith.mulf %22, %23 : vector<128x1xf32>
      %25 = vector.broadcast %24 : vector<128x1xf32> to vector<128x128xf32>
      %26 = arith.subf %15, %25 : vector<128x128xf32>
      %27 = vector.broadcast %20 : vector<1x128xf32> to vector<128x128xf32>
      %28 = arith.mulf %26, %27 : vector<128x128xf32>
      %29 = arith.mulf %28, %28 : vector<128x128xf32>
      %cst_12 = arith.constant dense<0.000000e+00> : vector<128xf32>
      %30 = vector.multi_reduction <add>, %29, %cst_12 [1] : vector<128x128xf32> to vector<128xf32>
      %31 = vector.shape_cast %30 : vector<128xf32> to vector<128x1xf32>
      %cst_13 = arith.constant 3.125000e-02 : f32
      %32 = vector.broadcast %cst_13 : f32 to vector<128x1xf32>
      %33 = arith.mulf %31, %32 : vector<128x1xf32>
      %cst_14 = arith.constant 9.99999974E-6 : f32
      %34 = vector.broadcast %cst_14 : f32 to vector<128x1xf32>
      %35 = arith.addf %33, %34 : vector<128x1xf32>
      %36 = math.rsqrt %35 : vector<128x1xf32>
      %37 = vector.broadcast %36 : vector<128x1xf32> to vector<128x128xf32>
      %38 = arith.mulf %28, %37 : vector<128x128xf32>
      %39 = vector.extract_strided_slice %8 {offsets = [1, 0], sizes = [1, 128], strides = [1, 1]} : vector<3x128xf32> to vector<1x128xf32>
      %40 = vector.broadcast %39 : vector<1x128xf32> to vector<128x128xf32>
      %41 = arith.mulf %38, %40 : vector<128x128xf32>
      %42 = vector.extract_strided_slice %8 {offsets = [2, 0], sizes = [1, 128], strides = [1, 1]} : vector<3x128xf32> to vector<1x128xf32>
      %43 = vector.broadcast %42 : vector<1x128xf32> to vector<128x128xf32>
      %44 = arith.addf %41, %43 : vector<128x128xf32>
      %45 = arith.truncf %44 : vector<128x128xf32> to vector<128x128xbf16>
      %cst_15 = arith.constant dense<0.000000e+00> : vector<128x128xf32>
      %46 = tpu.matmul %45, %9, %cst_15 {dimension_numbers = #tpu.dot_dimension_numbers<[1], [0], [0], [1], [0, 0, 1, 1], [], []>} : vector<128x128xbf16>, vector<128x128xbf16>, vector<128x128xf32> -> vector<128x128xf32>
      %47 = arith.truncf %46 : vector<128x128xf32> to vector<128x128xbf16>
      %48 = arith.index_cast %arg1 : i32 to index
      %c0_16 = arith.constant 0 : index
      %c0_17 = arith.constant 0 : index
      %49 = vector.load %arg8[%48, %c0_16, %c0_17] : memref<1x128x128xbf16, #tpu.memory_space<vmem>>, vector<1x128x128xbf16>
      %50 = vector.shape_cast %49 : vector<1x128x128xbf16> to vector<128x128xbf16>
      %51 = vector.shape_cast %47 : vector<128x128xbf16> to vector<1x128x128xbf16>
      tpu.vector_store %arg8[%48, %c0_16, %c0_17], %51 {strides = array<i32>} : memref<1x128x128xbf16, #tpu.memory_space<vmem>>, vector<1x128x128xbf16>,
    } else {
    }
    %c1_i32 = arith.constant 1 : i32
    %3 = arith.cmpi eq, %arg0, %c1_i32 : i32
    %4 = arith.extui %3 : i1 to i32
    %c0_i32_1 = arith.constant 0 : i32
    %5 = arith.cmpi ne, %4, %c0_i32_1 : i32
    scf.if %5 {
      %cst = arith.constant 0.000000e+00 : f32
      %6 = vector.broadcast %cst : f32 to vector<128x128xf32>
      %c0 = arith.constant 0 : index
      %c0_2 = arith.constant 0 : index
      %7 = vector.load %arg2[%c0, %c0_2] : memref<128x128xbf16, #tpu.memory_space<vmem>>, vector<128x128xbf16>
      %c0_3 = arith.constant 0 : index
      %c0_4 = arith.constant 0 : index
      %c0_5 = arith.constant 0 : index
      %8 = vector.load %arg8[%c0_3, %c0_4, %c0_5] : memref<1x128x128xbf16, #tpu.memory_space<vmem>>, vector<1x128x128xbf16>
      %9 = vector.shape_cast %8 : vector<1x128x128xbf16> to vector<128x128xbf16>
      %cst_6 = arith.constant dense<0.000000e+00> : vector<128x128xf32>
      %10 = tpu.matmul %7, %9, %cst_6 {dimension_numbers = #tpu.dot_dimension_numbers<[1], [0], [0], [1], [0, 0, 1, 1], [], []>} : vector<128x128xbf16>, vector<128x128xbf16>, vector<128x128xf32> -> vector<128x128xf32>
      %11 = arith.addf %6, %10 : vector<128x128xf32>
      %c0_7 = arith.constant 0 : index
      %c0_8 = arith.constant 0 : index
      %12 = vector.load %arg6[%c0_7, %c0_8] : memref<1x128xf32, #tpu.memory_space<vmem>>, vector<1x128xf32>
      %13 = vector.broadcast %12 : vector<1x128xf32> to vector<128x128xf32>
      %14 = arith.addf %11, %13 : vector<128x128xf32>
      %c0_9 = arith.constant 0 : index
      %c0_10 = arith.constant 0 : index
      %15 = vector.load %arg7[%c0_9, %c0_10] : memref<128x128xf32, #tpu.memory_space<vmem>>, vector<128x128xf32>
      tpu.vector_store %arg7[%c0_9, %c0_10], %14 {strides = array<i32>} : memref<128x128xf32, #tpu.memory_space<vmem>>, vector<128x128xf32>,
    } else {
    }
    return
  }
  func.func @transform_0(%arg0: i32, %arg1: i32) -> (i32, i32) {
    %c0_i32 = arith.constant 0 : i32
    %c0_i32_0 = arith.constant 0 : i32
    return %arg1, %c0_i32 : i32, i32
  }
  func.func @transform_1(%arg0: i32, %arg1: i32) -> (i32, i32) {
    %c0_i32 = arith.constant 0 : i32
    %c0_i32_0 = arith.constant 0 : i32
    %c0_i32_1 = arith.constant 0 : i32
    return %c0_i32, %c0_i32_0 : i32, i32
  }
  func.func @transform_2(%arg0: i32, %arg1: i32) -> (i32, i32) {
    %c0_i32 = arith.constant 0 : i32
    %c0_i32_0 = arith.constant 0 : i32
    %c0_i32_1 = arith.constant 0 : i32
    return %c0_i32, %c0_i32_0 : i32, i32
  }
  func.func @transform_3(%arg0: i32, %arg1: i32) -> (i32, i32) {
    %c0_i32 = arith.constant 0 : i32
    %c0_i32_0 = arith.constant 0 : i32
    %c0_i32_1 = arith.constant 0 : i32
    return %c0_i32, %c0_i32_0 : i32, i32
  }
  func.func @transform_4(%arg0: i32, %arg1: i32) -> (i32, i32) {
    %c0_i32 = arith.constant 0 : i32
    %c0_i32_0 = arith.constant 0 : i32
    %c0_i32_1 = arith.constant 0 : i32
    return %c0_i32, %c0_i32_0 : i32, i32
  }
  func.func @transform_5(%arg0: i32, %arg1: i32) -> (i32, i32) {
    %0 = arith.muli %arg1, %arg0 : i32
    %c0_i32 = arith.constant 0 : i32
    %c0_i32_0 = arith.constant 0 : i32
    return %0, %c0_i32 : i32, i32
  }
}

</mosaic_0001>

<bundles_post_ra>
// kernel: vgae_encoder.1
= control target key start
LH: loop header
LB: loop body
LE: loop exit
PB: predicated region body
PF: predicated region fallthrough
CT: control target
= control target key end

     0   :  { %s1754_s18 = smov 0   ;;  %s1756_s19 = smov 0   ;;  %s2193_s0 = inlined_call_operand.vmem [shape: bf16[128,128], index: 0, kind: input, shape index: {}]   ;;  %s2194_s1 = inlined_call_operand.vmem [shape: bf16[128,128], index: 1, kind: input, shape index: {}]   ;;  %s2195_s2 = inlined_call_operand.vmem [shape: f32[3,128], index: 2, kind: input, shape index: {}]   ;;  %s2196_s3 = inlined_call_operand.vmem [shape: bf16[128,128], index: 3, kind: input, shape index: {}]   ;;  %s2197_s4 = inlined_call_operand.vmem [shape: f32[1,128], index: 4, kind: input, shape index: {}]   ;;  %s2198_s5 = inlined_call_operand.vmem [shape: f32[128,128], index: 5, kind: output, shape index: {}]  }
   0x1   :  { %s1758_s20 = smov 0  }
   0x2 LB: > { %s27_s21 = sadd.s32 1, %s1717_s19  ;;  %p1314_p0 = scmp.ge.s32.totalorder %s1721_s20, 1  ;;  %s1721_s20 = sphi %s1758_s20, %s15_s20   ;;  %s1717_s19 = sphi %s1756_s19, %s2200_s19   ;;  %s1713_s18 = sphi %s1754_s18, %s2199_s18  }
   0x3   : > { %p29_p1 = scmp.ge.s32.totalorder %s27_s21, 2  ;;  %p202_p2 = scmp.lt.s32.totalorder %s1721_s20, 3 }
   0x5   : > { %s2202_s21 = smov (%p29_p1, %s27_s21), 0  ;;  %p203_p3 = pnand %p1314_p0, %p202_p2 }
   0x6   : > { %p1315_p4 = scmp.ne.s32.totalorder (!%p203_p3), %s1713_s18, 0 }
   0x7   : > { %206 = sbr.rel (%p203_p3) target bundleno = 1044 (0x414), region = 40 }
   0xc   : > { %249 = sbr.rel (%p1315_p4) target bundleno = 794 (0x31a), region = 44 }
  0x11   : > { %v1627_v0 = vld [vmem:[%s2194_s1 + $0x38] sm:$0xff]   ;;  %v1628_v1 = vld [vmem:[%s2194_s1 + $0x30] sm:$0xff]   ;;  %v1629_v2 = vld [vmem:[%s2194_s1 + $0x28] sm:$0xff]   ;;  %v299_v16 = vlaneseq }
  0x12   : > { %1490 = vmatprep.subr.bf16.mxu0 %v1627_v0  ;;  %v1630_v3 = vld [vmem:[%s2194_s1 + $0x20] sm:$0xff]   ;;  %v1631_v5 = vld [vmem:[%s2194_s1 + $0x18] sm:$0xff]   ;;  %v1632_v6 = vld [vmem:[%s2194_s1 + $0x10] sm:$0xff]  }
  0x13   : > { %1491 = vmatpush3.bf16.msra.mxu0 %v1627_v0  ;;  %v1635_v4 = vld [vmem:[%s2193_s0] sm:$0xff]   ;;  %v1633_v7 = vld [vmem:[%s2194_s1 + $0x8] sm:$0xff]   ;;  %v1637_v10 = vld [vmem:[%s2193_s0 + $0x10] sm:$0xff]   ;;  %v1824_v17 = vshrl.u32 %v299_v16, 7 }
  0x14   : > { %1492 = vmatprep.subr.bf16.mxu0 %v1628_v1  ;;  %1506 = vmatprep.mubr.bf16.mxu0 %v1635_v4  ;;  %v1634_v8 = vld [vmem:[%s2194_s1] sm:$0xff]   ;;  %v1636_v9 = vld [vmem:[%s2193_s0 + $0x8] sm:$0xff]   ;;  %v1638_v11 = vld [vmem:[%s2193_s0 + $0x18] sm:$0xff]  }
  0x15   : > { %v1639_v12 = vld [vmem:[%s2193_s0 + $0x20] sm:$0xff]   ;;  %v1640_v13 = vld [vmem:[%s2193_s0 + $0x28] sm:$0xff]   ;;  %v1641_v14 = vld [vmem:[%s2193_s0 + $0x30] sm:$0xff]   ;;  %v301_v18 = vsub.s32 0, %v1824_v17 }
  0x16   : > { %v1642_v15 = vld [vmem:[%s2193_s0 + $0x38] sm:$0xff]   ;;  %v1830_v19 = vld [vmem:[%s2195_s2] sm:$0x7] }
  0x17   : > { %1493 = vmatpush3.bf16.msra.mxu0 %v1628_v1  ;;  %v302_v20 = vrot.slane %v1830_v19, %v301_v18 }
  0x18   : > { %1494 = vmatprep.subr.bf16.mxu0 %v1629_v2 }
  0x1b   : > { %1495 = vmatpush3.bf16.msra.mxu0 %v1629_v2 }
  0x1c   : > { %1496 = vmatprep.subr.bf16.mxu0 %v1630_v3 }
  0x1f   : > { %1497 = vmatpush3.bf16.msra.mxu0 %v1630_v3 }
  0x20   : > { %1498 = vmatprep.subr.bf16.mxu0 %v1631_v5 }
  0x23   : > { %1499 = vmatpush3.bf16.msra.mxu0 %v1631_v5  ;;  %v513_v5 = vand.u32 127, %v299_v16 }
  0x24   : > { %1500 = vmatprep.subr.bf16.mxu0 %v1632_v6 }
  0x25   : > { %vm514_vm0 = vcmp.lt.s32.totalorder %v513_v5, 32  ;;  %v1643_v5 = vld [vmem:[%s2196_s3 + $0x38] sm:$0xff]  }
  0x26   : > { %1522 = vmatprep.subr.bf16.mxu1 %v1643_v5 }
  0x27   : > { %1501 = vmatpush3.bf16.msra.mxu0 %v1632_v6  ;;  %1523 = vmatpush3.bf16.msra.mxu1 %v1643_v5 }
  0x28   : > { %1502 = vmatprep.subr.bf16.mxu0 %v1633_v7 }
  0x2b   : > { %1503 = vmatpush3.bf16.msra.mxu0 %v1633_v7 }
  0x2c   : > { %1504 = vmatprep.subr.bf16.mxu0 %v1634_v8 }
  0x2f   : > { %1505 = vmatpush3.bf16.msra.mxu0 %v1634_v8 }
  0x32   : > { %1507 = vmatmul.mubr.bf16.vlgmr.msra.gmra.mxu0 %v1636_v9 }
  0x33   : > { %1510 = vmatprep.mubr.bf16.mxu0 %v1637_v10 }
  0x3a   : > { %1511 = vmatmul.mubr.bf16.gmra.mxu0 %v1638_v11 }
  0x3b   : > { %1514 = vmatprep.mubr.bf16.mxu0 %v1639_v12 }
  0x42   : > { %1515 = vmatmul.mubr.bf16.gmra.mxu0 %v1640_v13 }
  0x43   : > { %1518 = vmatprep.mubr.bf16.mxu0 %v1641_v14 }
  0x4a   : > { %1519 = vmatmul.mubr.bf16.gmra.mxu0 %v1642_v15  ;;  %v1723_v15 = vmov 0.0  }
  0x4b   : > { %v1918_v18 = vsel %vm514_vm0, 1.0, %v1723_v15 }
  0xf2   : > { %v1508_v21 = vpop.f32.mrf.mxu0 }
  0xf3   : > { %v1833_v22 = vadd.f32 %v1508_v21, %v302_v20 }
  0xf4   : > { %v433_v23 = vpop.f32.mrf.mxu0 }
  0xf5   : > { %v498_v24 = vmax.f32 %v1833_v22, 0.0  ;;  %v1836_v25 = vadd.f32 %v433_v23, %v302_v20 }
  0xf6   : > { %v1509_v26 = vpop.f32.mrf.mxu0 }
  0xf7   : > { %v496_v27 = vmax.f32 %v1836_v25, 0.0  ;;  %v1839_v28 = vadd.f32 %v1509_v26, %v302_v20  ;;  %521 = vadd.xlane.f32.xlu1 %v498_v24 }
  0xf8   : > { %v436_v29 = vpop.f32.mrf.mxu0 }
  0xf9   : > { %v499_v30 = vmax.f32 %v1839_v28, 0.0  ;;  %v1844_v31 = vadd.f32 %v436_v29, %v302_v20  ;;  %517 = vadd.xlane.f32.xlu0 %v496_v27 }
  0xfa   : > { %v1512_v32 = vpop.f32.mrf.mxu0 }
  0xfb   : > { %v497_v33 = vmax.f32 %v1844_v31, 0.0  ;;  %523 = vadd.xlane.f32.xlu1 %v499_v30  ;;  %v1855_v37 = vadd.f32 %v1512_v32, %v302_v20 }
  0xfc   : > { %v449_v34 = vpop.f32.mrf.mxu0 }
  0xfd   : > { %v1851_v35 = vadd.f32 %v449_v34, %v302_v20  ;;  %519 = vadd.xlane.f32.xlu0 %v497_v33  ;;  %v502_v42 = vmax.f32 %v1855_v37, 0.0 }
  0xfe   : > { %v1513_v36 = vpop.f32.mrf.mxu0 }
  0xff   : > { %v500_v38 = vmax.f32 %v1851_v35, 0.0  ;;  %v1863_v43 = vadd.f32 %v1513_v36, %v302_v20 }
 0x100   : > { %v452_v39 = vpop.f32.mrf.mxu0 }
 0x101   : > { %v1858_v40 = vadd.f32 %v452_v39, %v302_v20  ;;  %525 = vadd.xlane.f32.xlu0 %v500_v38  ;;  %v503_v48 = vmax.f32 %v1863_v43, 0.0 }
 0x102   : > { %v1516_v41 = vpop.f32.mrf.mxu0 }
 0x103   : > { %v501_v44 = vmax.f32 %v1858_v40, 0.0  ;;  %v1873_v49 = vadd.f32 %v1516_v41, %v302_v20 }
 0x104   : > { %v465_v45 = vpop.f32.mrf.mxu0 }
 0x105   : > { %v1866_v46 = vadd.f32 %v465_v45, %v302_v20  ;;  %527 = vadd.xlane.f32.xlu1 %v501_v44  ;;  %529 = vadd.xlane.f32.xlu0 %v502_v42  ;;  %v506_v54 = vmax.f32 %v1873_v49, 0.0 }
 0x106   : > { %v1517_v47 = vpop.f32.mrf.mxu0 }
 0x107   : > { %v504_v50 = vmax.f32 %v1866_v46, 0.0  ;;  %v1883_v55 = vadd.f32 %v1517_v47, %v302_v20 }
 0x108   : > { %v468_v51 = vpop.f32.mrf.mxu0 }
 0x109   : > { %v1876_v52 = vadd.f32 %v468_v51, %v302_v20  ;;  %531 = vadd.xlane.f32.xlu1 %v503_v48  ;;  %533 = vadd.xlane.f32.xlu0 %v504_v50  ;;  %v507_v60 = vmax.f32 %v1883_v55, 0.0 }
 0x10a   : > { %v1520_v53 = vpop.f32.mrf.mxu0 }
 0x10b   : > { %v505_v56 = vmax.f32 %v1876_v52, 0.0  ;;  %v1893_v61 = vadd.f32 %v1520_v53, %v302_v20 }
 0x10c   : > { %v481_v57 = vpop.f32.mrf.mxu0 }
 0x10d   : > { %v1886_v58 = vadd.f32 %v481_v57, %v302_v20  ;;  %535 = vadd.xlane.f32.xlu1 %v505_v56  ;;  %537 = vadd.xlane.f32.xlu0 %v506_v54  ;;  %v510_v1 = vmax.f32 %v1893_v61, 0.0 }
 0x10e   : > { %v1521_v59 = vpop.f32.mrf.mxu0 }
 0x10f   : > { %v508_v62 = vmax.f32 %v1886_v58, 0.0  ;;  %v1903_v2 = vadd.f32 %v1521_v59, %v302_v20 }
 0x110   : > { %v484_v63 = vpop.f32.mrf.mxu0 }
 0x111   : > { %v1896_v0 = vadd.f32 %v484_v63, %v302_v20  ;;  %539 = vadd.xlane.f32.xlu1 %v507_v60  ;;  %541 = vadd.xlane.f32.xlu0 %v508_v62  ;;  %v511_v4 = vmax.f32 %v1903_v2, 0.0 }
 0x113   : > { %v509_v3 = vmax.f32 %v1896_v0, 0.0 }
 0x115   : > { %543 = vadd.xlane.f32.xlu1 %v509_v3  ;;  %545 = vadd.xlane.f32.xlu0 %v510_v1 }
 0x119   : > { %547 = vadd.xlane.f32.xlu1 %v511_v4 }
 0x180   : > { %v522_v6 = vpop.xlane.xlu1 %521 }
 0x181   : > { %v551_v7 = vmul.f32 0.03125, %v522_v6 }
 0x182   : > { %v518_v8 = vpop.xlane.xlu0 %517 }
 0x183   : > { %v549_v9 = vmul.f32 0.03125, %v518_v8  ;;  %v567_v11 = vsub.f32 %v498_v24, %v551_v7 }
 0x184   : > { %v524_v10 = vpop.xlane.xlu1 %523 }
 0x185   : > { %v565_v12 = vsub.f32 %v496_v27, %v549_v9  ;;  %v552_v13 = vmul.f32 0.03125, %v524_v10  ;;  %v1930_v24 = vmul.f32 %v1918_v18, %v567_v11 }
 0x186   : > { %v520_v14 = vpop.xlane.xlu0 %519 }
 0x187   : > { %v550_v20 = vmul.f32 0.03125, %v520_v14  ;;  %v1921_v16 = vmul.f32 %v1918_v18, %v565_v12  ;;  %v568_v21 = vsub.f32 %v499_v30, %v552_v13  ;;  %v599_v28 = vmul.f32 %v1930_v24, %v1930_v24  ;;  %v1644_v14 = vld [vmem:[%s2196_s3 + $0x30] sm:$0xff]  }
 0x188   : > { %1524 = vmatprep.subr.bf16.mxu1 %v1644_v14 }
 0x189   : > { %v566_v23 = vsub.f32 %v497_v33, %v550_v20  ;;  %v597_v22 = vmul.f32 %v1921_v16, %v1921_v16  ;;  %v1942_v31 = vmul.f32 %v1918_v18, %v568_v21  ;;  %1525 = vmatpush3.bf16.msra.mxu1 %v1644_v14  ;;  %v711_v14 = vsub.s32 1, %v1824_v17 }
 0x18a   : > { %v526_v25 = vpop.xlane.xlu0 %525 }
 0x18b   : > { %v553_v26 = vmul.f32 0.03125, %v526_v25  ;;  %613 = vadd.xlane.f32.xlu0 %v597_v22  ;;  %v1933_v27 = vmul.f32 %v1918_v18, %v566_v23  ;;  %v600_v41 = vmul.f32 %v1942_v31, %v1942_v31 }
 0x18d   : > { %v569_v29 = vsub.f32 %v500_v38, %v553_v26  ;;  %v598_v30 = vmul.f32 %v1933_v27, %v1933_v27  ;;  %v1645_v26 = vld [vmem:[%s2196_s3 + $0x28] sm:$0xff]  }
 0x18e   : > { %v528_v32 = vpop.xlane.xlu1 %527  ;;  %v530_v33 = vpop.xlane.xlu0 %529  ;;  %1526 = vmatprep.subr.bf16.mxu1 %v1645_v26 }
 0x18f   : > { %v554_v34 = vmul.f32 0.03125, %v528_v32  ;;  %v555_v36 = vmul.f32 0.03125, %v530_v33  ;;  %617 = vadd.xlane.f32.xlu0 %v599_v28  ;;  %615 = vadd.xlane.f32.xlu1 %v598_v30  ;;  %v1945_v39 = vmul.f32 %v1918_v18, %v569_v29 }
 0x190   : > { %1527 = vmatpush3.bf16.msra.mxu1 %v1645_v26  ;;  %v731_v26 = vsub.s32 2, %v1824_v17 }
 0x191   : > { %v570_v35 = vsub.f32 %v501_v44, %v554_v34  ;;  %v571_v38 = vsub.f32 %v502_v42, %v555_v36  ;;  %v601_v45 = vmul.f32 %v1945_v39, %v1945_v39  ;;  %v1646_v34 = vld [vmem:[%s2196_s3 + $0x20] sm:$0xff]  }
 0x192   : > { %v532_v47 = vpop.xlane.xlu1 %531  ;;  %v534_v51 = vpop.xlane.xlu0 %533  ;;  %1528 = vmatprep.subr.bf16.mxu1 %v1646_v34 }
 0x193   : > { %v556_v53 = vmul.f32 0.03125, %v532_v47  ;;  %v557_v57 = vmul.f32 0.03125, %v534_v51  ;;  %619 = vadd.xlane.f32.xlu1 %v600_v41  ;;  %621 = vadd.xlane.f32.xlu0 %v601_v45  ;;  %v1956_v59 = vmul.f32 %v1918_v18, %v570_v35  ;;  %v1959_v40 = vmul.f32 %v1918_v18, %v571_v38  ;;  %v1647_v38 = vld [vmem:[%s2196_s3 + $0x18] sm:$0xff]   ;;  %v1649_v45 = vld [vmem:[%s2196_s3 + $0x8] sm:$0xff]  }
 0x194   : > { %1529 = vmatpush3.bf16.msra.mxu1 %v1646_v34 }
 0x195   : > { %v572_v37 = vsub.f32 %v503_v48, %v556_v53  ;;  %v573_v42 = vsub.f32 %v504_v50, %v557_v57  ;;  %v602_v44 = vmul.f32 %v1956_v59, %v1956_v59  ;;  %v603_v63 = vmul.f32 %v1959_v40, %v1959_v40  ;;  %1530 = vmatprep.subr.bf16.mxu1 %v1647_v38 }
 0x196   : > { %v536_v6 = vpop.xlane.xlu1 %535  ;;  %v538_v7 = vpop.xlane.xlu0 %537 }
 0x197   : > { %v558_v8 = vmul.f32 0.03125, %v536_v6  ;;  %v559_v9 = vmul.f32 0.03125, %v538_v7  ;;  %623 = vadd.xlane.f32.xlu1 %v602_v44  ;;  %625 = vadd.xlane.f32.xlu0 %v603_v63  ;;  %v1973_v43 = vmul.f32 %v1918_v18, %v572_v37  ;;  %v1976_v46 = vmul.f32 %v1918_v18, %v573_v42 }
 0x198   : > { %1531 = vmatpush3.bf16.msra.mxu1 %v1647_v38 }
 0x199   : > { %v574_v48 = vsub.f32 %v505_v56, %v558_v8  ;;  %v575_v50 = vsub.f32 %v506_v54, %v559_v9  ;;  %v604_v10 = vmul.f32 %v1973_v43, %v1973_v43  ;;  %v605_v11 = vmul.f32 %v1976_v46, %v1976_v46 }
 0x19a   : > { %v540_v12 = vpop.xlane.xlu1 %539  ;;  %v542_v13 = vpop.xlane.xlu0 %541 }
 0x19b   : > { %v560_v15 = vmul.f32 0.03125, %v540_v12  ;;  %v561_v20 = vmul.f32 0.03125, %v542_v13  ;;  %627 = vadd.xlane.f32.xlu1 %v604_v10  ;;  %629 = vadd.xlane.f32.xlu0 %v605_v11  ;;  %v1990_v49 = vmul.f32 %v1918_v18, %v574_v48  ;;  %v1993_v52 = vmul.f32 %v1918_v18, %v575_v50 }
 0x19d   : > { %v576_v54 = vsub.f32 %v507_v60, %v560_v15  ;;  %v577_v56 = vsub.f32 %v508_v62, %v561_v20  ;;  %v606_v21 = vmul.f32 %v1990_v49, %v1990_v49  ;;  %v607_v23 = vmul.f32 %v1993_v52, %v1993_v52 }
 0x19e   : > { %v544_v22 = vpop.xlane.xlu1 %543  ;;  %v546_v25 = vpop.xlane.xlu0 %545 }
 0x19f   : > { %v562_v29 = vmul.f32 0.03125, %v544_v22  ;;  %v563_v28 = vmul.f32 0.03125, %v546_v25  ;;  %631 = vadd.xlane.f32.xlu1 %v606_v21  ;;  %633 = vadd.xlane.f32.xlu0 %v607_v23  ;;  %v2007_v55 = vmul.f32 %v1918_v18, %v576_v54  ;;  %v2010_v58 = vmul.f32 %v1918_v18, %v577_v56 }
 0x1a0   : > { %v2054_v25 = vrot.slane %v1830_v19, %v711_v14 }
 0x1a1   : > { %v578_v60 = vsub.f32 %v509_v3, %v562_v29  ;;  %v579_v62 = vsub.f32 %v510_v1, %v563_v28  ;;  %v608_v30 = vmul.f32 %v2007_v55, %v2007_v55  ;;  %v609_v32 = vmul.f32 %v2010_v58, %v2010_v58 }
 0x1a2   : > { %v548_v33 = vpop.xlane.xlu1 %547 }
 0x1a3   : > { %v564_v36 = vmul.f32 0.03125, %v548_v33  ;;  %635 = vadd.xlane.f32.xlu1 %v608_v30  ;;  %637 = vadd.xlane.f32.xlu0 %v609_v32  ;;  %v2024_v0 = vmul.f32 %v1918_v18, %v578_v60  ;;  %v2027_v61 = vmul.f32 %v1918_v18, %v579_v62 }
 0x1a5   : > { %v580_v1 = vsub.f32 %v511_v4, %v564_v36  ;;  %v610_v3 = vmul.f32 %v2024_v0, %v2024_v0  ;;  %v611_v35 = vmul.f32 %v2027_v61, %v2027_v61  ;;  %v1648_v4 = vld [vmem:[%s2196_s3 + $0x10] sm:$0xff]  }
 0x1a6   : > { %1532 = vmatprep.subr.bf16.mxu1 %v1648_v4 }
 0x1a7   : > { %639 = vadd.xlane.f32.xlu1 %v610_v3  ;;  %641 = vadd.xlane.f32.xlu0 %v611_v35  ;;  %v2039_v41 = vmul.f32 %v1918_v18, %v580_v1  ;;  %v1650_v18 = vld [vmem:[%s2196_s3] sm:$0xff]   ;;  %v2060_v1 = vrot.slane %v1830_v19, %v731_v26 }
 0x1a8   : > { %1533 = vmatpush3.bf16.msra.mxu1 %v1648_v4 }
 0x1a9   : > { %v612_v2 = vmul.f32 %v2039_v41, %v2039_v41  ;;  %1534 = vmatprep.subr.bf16.mxu1 %v1649_v45 }
 0x1ab   : > { %643 = vadd.xlane.f32.xlu1 %v612_v2 }
 0x1ac   : > { %1535 = vmatpush3.bf16.msra.mxu1 %v1649_v45 }
 0x1ad   : > { %1536 = vmatprep.subr.bf16.mxu1 %v1650_v18 }
 0x1b0   : > { %1537 = vmatpush3.bf16.msra.mxu1 %v1650_v18 }
 0x214   : > { %v614_v47 = vpop.xlane.xlu0 %613 }
 0x215   : > { %v645_v51 = vmul.f32 0.03125, %v614_v47 }
 0x217   : > { %v661_v53 = vadd.f32 1e-05, %v645_v51 }
 0x218   : > { %v616_v57 = vpop.xlane.xlu1 %615  ;;  %v618_v37 = vpop.xlane.xlu0 %617 }
 0x219   : > { %1651 = vrsqrt.f32 %v661_v53  ;;  %v646_v42 = vmul.f32 0.03125, %v616_v57  ;;  %v647_v44 = vmul.f32 0.03125, %v618_v37 }
 0x21b   : > { %v662_v63 = vadd.f32 1e-05, %v646_v42  ;;  %v663_v5 = vadd.f32 1e-05, %v647_v44 }
 0x21c   : > { %v620_v6 = vpop.xlane.xlu1 %619  ;;  %v622_v7 = vpop.xlane.xlu0 %621 }
 0x21d   : > { %1653 = vrsqrt.f32 %v662_v63  ;;  %v648_v8 = vmul.f32 0.03125, %v620_v6  ;;  %v649_v9 = vmul.f32 0.03125, %v622_v7 }
 0x21e   : > { %1655 = vrsqrt.f32 %v663_v5 }
 0x21f   : > { %v664_v48 = vadd.f32 1e-05, %v648_v8  ;;  %v665_v50 = vadd.f32 1e-05, %v649_v9 }
 0x220   : > { %v624_v10 = vpop.xlane.xlu1 %623  ;;  %v626_v11 = vpop.xlane.xlu0 %625 }
 0x221   : > { %1657 = vrsqrt.f32 %v664_v48  ;;  %v650_v12 = vmul.f32 0.03125, %v624_v10  ;;  %v651_v13 = vmul.f32 0.03125, %v626_v11 }
 0x222   : > { %1659 = vrsqrt.f32 %v665_v50 }
 0x223   : > { %v666_v15 = vadd.f32 1e-05, %v650_v12  ;;  %v667_v20 = vadd.f32 1e-05, %v651_v13 }
 0x224   : > { %v628_v54 = vpop.xlane.xlu1 %627  ;;  %v630_v56 = vpop.xlane.xlu0 %629 }
 0x225   : > { %1661 = vrsqrt.f32 %v666_v15  ;;  %v652_v21 = vmul.f32 0.03125, %v628_v54  ;;  %v653_v23 = vmul.f32 0.03125, %v630_v56 }
 0x226   : > { %v1652_v22 = vpop.eup %1651  ;;  %1663 = vrsqrt.f32 %v667_v20 }
 0x227   : > { %v668_v29 = vadd.f32 1e-05, %v652_v21  ;;  %v669_v28 = vadd.f32 1e-05, %v653_v23  ;;  %v693_v60 = vmul.f32 %v1652_v22, %v1921_v16 }
 0x228   : > { %v632_v62 = vpop.xlane.xlu1 %631  ;;  %v634_v30 = vpop.xlane.xlu0 %633 }
 0x229   : > { %1665 = vrsqrt.f32 %v668_v29  ;;  %v654_v32 = vmul.f32 0.03125, %v632_v62  ;;  %v655_v33 = vmul.f32 0.03125, %v634_v30  ;;  %v713_v36 = vmul.f32 %v2054_v25, %v693_v60 }
 0x22a   : > { %v1654_v34 = vpop.eup %1653  ;;  %1667 = vrsqrt.f32 %v669_v28 }
 0x22b   : > { %v1656_v3 = vpop.eup %1655  ;;  %v670_v35 = vadd.f32 1e-05, %v654_v32  ;;  %v671_v38 = vadd.f32 1e-05, %v655_v33  ;;  %v694_v17 = vmul.f32 %v1654_v34, %v1933_v27  ;;  %v733_v53 = vadd.f32 %v2060_v1, %v713_v36 }
 0x22c   : > { %v636_v2 = vpop.xlane.xlu1 %635  ;;  %v638_v4 = vpop.xlane.xlu0 %637  ;;  %v695_v16 = vmul.f32 %v1656_v3, %v1930_v24 }
 0x22d   : > { %1669 = vrsqrt.f32 %v670_v35  ;;  %v656_v45 = vmul.f32 0.03125, %v636_v2  ;;  %v657_v18 = vmul.f32 0.03125, %v638_v4  ;;  %v714_v47 = vmul.f32 %v2054_v25, %v694_v17 }
 0x22e   : > { %v1658_v51 = vpop.eup %1657  ;;  %1671 = vrsqrt.f32 %v671_v38  ;;  %v715_v24 = vmul.f32 %v2054_v25, %v695_v16 }
 0x22f   : > { %v1660_v19 = vpop.eup %1659  ;;  %v672_v57 = vadd.f32 1e-05, %v656_v45  ;;  %v673_v37 = vadd.f32 1e-05, %v657_v18  ;;  %v734_v42 = vadd.f32 %v2060_v1, %v714_v47  ;;  %v696_v27 = vmul.f32 %v1658_v51, %v1942_v31 }
 0x230   : > { %v640_v44 = vpop.xlane.xlu1 %639  ;;  %v642_v63 = vpop.xlane.xlu0 %641  ;;  %v697_v5 = vmul.f32 %v1660_v19, %v1945_v39  ;;  %v735_v14 = vadd.f32 %v2060_v1, %v715_v24 }
 0x231   : > { %1673 = vrsqrt.f32 %v672_v57  ;;  %v658_v6 = vmul.f32 0.03125, %v640_v44  ;;  %v659_v7 = vmul.f32 0.03125, %v642_v63  ;;  %v749_v8 = vpack.c.bf16 %v734_v42, %v733_v53 }
 0x232   : > { %v1662_v9 = vpop.eup %1661  ;;  %1675 = vrsqrt.f32 %v673_v37  ;;  %v716_v48 = vmul.f32 %v2054_v25, %v696_v27  ;;  %v717_v50 = vmul.f32 %v2054_v25, %v697_v5 }
 0x233   : > { %v1664_v10 = vpop.eup %1663  ;;  %v674_v11 = vadd.f32 1e-05, %v658_v6  ;;  %v675_v12 = vadd.f32 1e-05, %v659_v7  ;;  %1538 = vmatprep.mubr.bf16.mxu1 %v749_v8  ;;  %v698_v31 = vmul.f32 %v1662_v9, %v1956_v59 }
 0x234   : > { %v644_v13 = vpop.xlane.xlu1 %643  ;;  %v736_v39 = vadd.f32 %v2060_v1, %v716_v48  ;;  %v699_v15 = vmul.f32 %v1664_v10, %v1959_v40  ;;  %v737_v23 = vadd.f32 %v2060_v1, %v717_v50 }
 0x235   : > { %1677 = vrsqrt.f32 %v674_v11  ;;  %v660_v20 = vmul.f32 0.03125, %v644_v13  ;;  %v718_v54 = vmul.f32 %v2054_v25, %v698_v31 }
 0x236   : > { %v1666_v56 = vpop.eup %1665  ;;  %1679 = vrsqrt.f32 %v675_v12  ;;  %v750_v21 = vpack.c.bf16 %v736_v39, %v735_v14  ;;  %v719_v28 = vmul.f32 %v2054_v25, %v699_v15 }
 0x237   : > { %v1668_v22 = vpop.eup %1667  ;;  %v676_v26 = vadd.f32 1e-05, %v660_v20  ;;  %v738_v59 = vadd.f32 %v2060_v1, %v718_v54  ;;  %v700_v29 = vmul.f32 %v1666_v56, %v1973_v43 }
 0x238   : > { %1539 = vmatmul.mubr.bf16.vlgmr.msra.gmra.mxu1 %v750_v21  ;;  %v701_v40 = vmul.f32 %v1668_v22, %v1976_v46  ;;  %v739_v33 = vadd.f32 %v2060_v1, %v719_v28 }
 0x239   : > { %1681 = vrsqrt.f32 %v676_v26  ;;  %v751_v60 = vpack.c.bf16 %v738_v59, %v737_v23  ;;  %v720_v62 = vmul.f32 %v2054_v25, %v700_v29 }
 0x23a   : > { %v1670_v30 = vpop.eup %1669  ;;  %v721_v43 = vmul.f32 %v2054_v25, %v701_v40 }
 0x23b   : > { %v1672_v32 = vpop.eup %1671  ;;  %1542 = vmatprep.mubr.bf16.mxu1 %v751_v60  ;;  %v740_v34 = vadd.f32 %v2060_v1, %v720_v62  ;;  %v702_v36 = vmul.f32 %v1670_v30, %v1990_v49 }
 0x23c   : > { %v703_v3 = vmul.f32 %v1672_v32, %v1993_v52  ;;  %v741_v2 = vadd.f32 %v2060_v1, %v721_v43 }
 0x23d   : > { %v752_v35 = vpack.c.bf16 %v740_v34, %v739_v33  ;;  %v722_v46 = vmul.f32 %v2054_v25, %v702_v36 }
 0x23e   : > { %v1674_v38 = vpop.eup %1673  ;;  %v723_v45 = vmul.f32 %v2054_v25, %v703_v3 }
 0x23f   : > { %v1676_v17 = vpop.eup %1675  ;;  %v742_v4 = vadd.f32 %v2060_v1, %v722_v46  ;;  %v704_v16 = vmul.f32 %v1674_v38, %v2007_v55 }
 0x240   : > { %1543 = vmatmul.mubr.bf16.gmra.mxu1 %v752_v35  ;;  %v705_v49 = vmul.f32 %v1676_v17, %v2010_v58  ;;  %v743_v53 = vadd.f32 %v2060_v1, %v723_v45 }
 0x241   : > { %v753_v18 = vpack.c.bf16 %v742_v4, %v741_v2  ;;  %v724_v47 = vmul.f32 %v2054_v25, %v704_v16 }
 0x242   : > { %v1678_v52 = vpop.eup %1677  ;;  %v725_v37 = vmul.f32 %v2054_v25, %v705_v49 }
 0x243   : > { %v1680_v51 = vpop.eup %1679  ;;  %1546 = vmatprep.mubr.bf16.mxu1 %v753_v18  ;;  %v744_v19 = vadd.f32 %v2060_v1, %v724_v47  ;;  %v706_v57 = vmul.f32 %v1678_v52, %v2024_v0 }
 0x244   : > { %v707_v55 = vmul.f32 %v1680_v51, %v2027_v61  ;;  %v745_v44 = vadd.f32 %v2060_v1, %v725_v37 }
 0x245   : > { %v754_v42 = vpack.c.bf16 %v744_v19, %v743_v53  ;;  %v726_v27 = vmul.f32 %v2054_v25, %v706_v57 }
 0x246   : > { %v1682_v58 = vpop.eup %1681  ;;  %v727_v5 = vmul.f32 %v2054_v25, %v707_v55 }
 0x247   : > { %v746_v63 = vadd.f32 %v2060_v1, %v726_v27  ;;  %v708_v24 = vmul.f32 %v1682_v58, %v2039_v41 }
 0x248   : > { %1547 = vmatmul.mubr.bf16.gmra.mxu1 %v754_v42  ;;  %v747_v7 = vadd.f32 %v2060_v1, %v727_v5 }
 0x249   : > { %v755_v6 = vpack.c.bf16 %v746_v63, %v745_v44  ;;  %v728_v0 = vmul.f32 %v2054_v25, %v708_v24 }
 0x24b   : > { %1550 = vmatprep.mubr.bf16.mxu1 %v755_v6  ;;  %v748_v61 = vadd.f32 %v2060_v1, %v728_v0 }
 0x24d   : > { %v756_v8 = vpack.c.bf16 %v748_v61, %v747_v7 }
 0x250   : > { %1551 = vmatmul.mubr.bf16.gmra.mxu1 %v756_v8 }
 0x2f8   : > { %v1540_v9 = vpop.f32.mrf.mxu1 }
 0x2fa   : > { %v839_v48 = vpop.f32.mrf.mxu1 }
 0x2fc   : > { %v1541_v50 = vpop.f32.mrf.mxu1 }
 0x2fd   : > { %v1403_v10 = vpack.c.bf16 %v1541_v50, %v1540_v9 }
 0x2fe   : > { %v842_v11 = vpop.f32.mrf.mxu1 }
 0x2ff   : > { %1435 = vst [vmem:[#allocation2 + $0x8] sm:$0xff] %v1403_v10   ;;  %v1398_v41 = vpack.c.bf16 %v842_v11, %v839_v48 }
 0x300   : > { %v1544_v12 = vpop.f32.mrf.mxu1 }
 0x301   : > { %1399 = vst [vmem:[#allocation2] sm:$0xff] %v1398_v41  }
 0x302   : > { %v855_v31 = vpop.f32.mrf.mxu1 }
 0x304   : > { %v1545_v13 = vpop.f32.mrf.mxu1 }
 0x305   : > { %v1413_v14 = vpack.c.bf16 %v1545_v13, %v1544_v12 }
 0x306   : > { %v858_v25 = vpop.f32.mrf.mxu1 }
 0x307   : > { %1437 = vst [vmem:[#allocation2 + $0x18] sm:$0xff] %v1413_v14   ;;  %v1408_v39 = vpack.c.bf16 %v858_v25, %v855_v31 }
 0x308   : > { %v1548_v15 = vpop.f32.mrf.mxu1 }
 0x309   : > { %1436 = vst [vmem:[#allocation2 + $0x10] sm:$0xff] %v1408_v39  }
 0x30a   : > { %v871_v1 = vpop.f32.mrf.mxu1 }
 0x30c   : > { %v1549_v20 = vpop.f32.mrf.mxu1 }
 0x30d   : > { %v1423_v54 = vpack.c.bf16 %v1549_v20, %v1548_v15 }
 0x30e   : > { %v874_v56 = vpop.f32.mrf.mxu1 }
 0x30f   : > { %1439 = vst [vmem:[#allocation2 + $0x28] sm:$0xff] %v1423_v54   ;;  %v1418_v21 = vpack.c.bf16 %v874_v56, %v871_v1 }
 0x310   : > { %v1552_v23 = vpop.f32.mrf.mxu1 }
 0x311   : > { %1438 = vst [vmem:[#allocation2 + $0x20] sm:$0xff] %v1418_v21  }
 0x312   : > { %v887_v22 = vpop.f32.mrf.mxu1 }
 0x314   : > { %v1553_v26 = vpop.f32.mrf.mxu1 }
 0x315   : > { %v1433_v59 = vpack.c.bf16 %v1553_v26, %v1552_v23 }
 0x316   : > { %v890_v29 = vpop.f32.mrf.mxu1 }
 0x317   : > { %1441 = vst [vmem:[#allocation2 + $0x38] sm:$0xff] %v1433_v59   ;;  %v1428_v28 = vpack.c.bf16 %v890_v29, %v887_v22 }
 0x319   : > { %1440 = vst [vmem:[#allocation2 + $0x30] sm:$0xff] %v1428_v28  }
 0x31a PF: > { %p1357_p5 = scmp.ne.s32.totalorder %s1713_s18, 1 }
 0x31c   : > { %988 = sbr.rel (%p1357_p5) target bundleno = 1044 (0x414), region = 48 }
 0x321   : > { %v1683_v40 = vld [vmem:[#allocation2 + $0x38] sm:$0xff]   ;;  %v1684_v60 = vld [vmem:[#allocation2 + $0x30] sm:$0xff]   ;;  %v1685_v62 = vld [vmem:[#allocation2 + $0x28] sm:$0xff]  }
 0x322   : > { %1554 = vmatprep.subr.bf16.mxu0 %v1683_v40  ;;  %1586 = vmatprep.subr.bf16.mxu1 %v1683_v40  ;;  %v1686_v30 = vld [vmem:[#allocation2 + $0x20] sm:$0xff]   ;;  %v1687_v34 = vld [vmem:[#allocation2 + $0x18] sm:$0xff]   ;;  %v1688_v36 = vld [vmem:[#allocation2 + $0x10] sm:$0xff]  }
 0x323   : > { %1555 = vmatpush3.bf16.msra.mxu0 %v1683_v40  ;;  %1594 = vmatpush3.bf16.msra.mxu1 %v1683_v40  ;;  %v1691_v32 = vld [vmem:[%s2193_s0] sm:$0xff]   ;;  %v1689_v43 = vld [vmem:[#allocation2 + $0x8] sm:$0xff]   ;;  %v1695_v38 = vld [vmem:[%s2193_s0 + $0x10] sm:$0xff]  }
 0x324   : > { %1556 = vmatprep.subr.bf16.mxu0 %v1684_v60  ;;  %1587 = vmatprep.subr.bf16.mxu1 %v1684_v60  ;;  %v1692_v33 = vld [vmem:[%s2193_s0 + $0x20] sm:$0xff]   ;;  %v1693_v35 = vld [vmem:[%s2193_s0 + $0x8] sm:$0xff]   ;;  %v1696_v17 = vld [vmem:[%s2193_s0 + $0x30] sm:$0xff]  }
 0x325   : > { %1570 = vmatprep.mubr.bf16.mxu0 %v1691_v32  ;;  %1578 = vmatprep.mubr.bf16.mxu1 %v1692_v33  ;;  %v1690_v3 = vld [vmem:[#allocation2] sm:$0xff]   ;;  %v1694_v46 = vld [vmem:[%s2193_s0 + $0x28] sm:$0xff]   ;;  %v1697_v2 = vld [vmem:[%s2193_s0 + $0x18] sm:$0xff]  }
 0x326   : > { %v1698_v4 = vld [vmem:[%s2193_s0 + $0x38] sm:$0xff]   ;;  %v1358_v16 = vld [vmem:[%s2197_s4] ss:$0 sm:$0xff] }
 0x327   : > { %1557 = vmatpush3.bf16.msra.mxu0 %v1684_v60  ;;  %1595 = vmatpush3.bf16.msra.mxu1 %v1684_v60 }
 0x328   : > { %1558 = vmatprep.subr.bf16.mxu0 %v1685_v62  ;;  %1588 = vmatprep.subr.bf16.mxu1 %v1685_v62 }
 0x32b   : > { %1559 = vmatpush3.bf16.msra.mxu0 %v1685_v62  ;;  %1596 = vmatpush3.bf16.msra.mxu1 %v1685_v62 }
 0x32c   : > { %1560 = vmatprep.subr.bf16.mxu0 %v1686_v30  ;;  %1589 = vmatprep.subr.bf16.mxu1 %v1686_v30 }
 0x32f   : > { %1561 = vmatpush3.bf16.msra.mxu0 %v1686_v30  ;;  %1597 = vmatpush3.bf16.msra.mxu1 %v1686_v30 }
 0x330   : > { %1562 = vmatprep.subr.bf16.mxu0 %v1687_v34  ;;  %1590 = vmatprep.subr.bf16.mxu1 %v1687_v34 }
 0x333   : > { %1563 = vmatpush3.bf16.msra.mxu0 %v1687_v34  ;;  %1598 = vmatpush3.bf16.msra.mxu1 %v1687_v34 }
 0x334   : > { %1564 = vmatprep.subr.bf16.mxu0 %v1688_v36  ;;  %1591 = vmatprep.subr.bf16.mxu1 %v1688_v36 }
 0x337   : > { %1565 = vmatpush3.bf16.msra.mxu0 %v1688_v36  ;;  %1599 = vmatpush3.bf16.msra.mxu1 %v1688_v36 }
 0x338   : > { %1566 = vmatprep.subr.bf16.mxu0 %v1689_v43  ;;  %1592 = vmatprep.subr.bf16.mxu1 %v1689_v43 }
 0x33b   : > { %1567 = vmatpush3.bf16.msra.mxu0 %v1689_v43  ;;  %1600 = vmatpush3.bf16.msra.mxu1 %v1689_v43 }
 0x33c   : > { %1568 = vmatprep.subr.bf16.mxu0 %v1690_v3  ;;  %1593 = vmatprep.subr.bf16.mxu1 %v1690_v3 }
 0x33f   : > { %1569 = vmatpush3.bf16.msra.mxu0 %v1690_v3  ;;  %1601 = vmatpush3.bf16.msra.mxu1 %v1690_v3 }
 0x342   : > { %1571 = vmatmul.mubr.bf16.vlgmr.msra.gmra.mxu0 %v1693_v35  ;;  %1579 = vmatmul.mubr.bf16.vlgmr.msra.gmra.mxu1 %v1694_v46 }
 0x343   : > { %1574 = vmatprep.mubr.bf16.mxu0 %v1695_v38  ;;  %1582 = vmatprep.mubr.bf16.mxu1 %v1696_v17 }
 0x34a   : > { %1575 = vmatmul.mubr.bf16.gmra.mxu0 %v1697_v2  ;;  %1583 = vmatmul.mubr.bf16.gmra.mxu1 %v1698_v4 }
 0x402   : > { %v1572_v45 = vpop.f32.mrf.mxu0  ;;  %v1580_v49 = vpop.f32.mrf.mxu1 }
 0x403   : > { %v1167_v18 = vadd.f32 %v1572_v45, %v1358_v16  ;;  %v1199_v47 = vadd.f32 %v1580_v49, %v1358_v16 }
 0x404   : > { %v1158_v52 = vpop.f32.mrf.mxu0  ;;  %v1190_v51 = vpop.f32.mrf.mxu1 }
 0x405   : > { %1223 = vst [vmem:[%s2198_s5 + $0x10] sm:$0xff] %v1167_v18  ;;  %1231 = vst [vmem:[%s2198_s5 + $0x50] sm:$0xff] %v1199_v47  ;;  %v1159_v53 = vadd.f32 %v1358_v16, %v1158_v52  ;;  %v1191_v19 = vadd.f32 %v1358_v16, %v1190_v51 }
 0x406   : > { %v1573_v57 = vpop.f32.mrf.mxu0  ;;  %v1581_v37 = vpop.f32.mrf.mxu1 }
 0x407   : > { %1221 = vst [vmem:[%s2198_s5] sm:$0xff] %v1159_v53  ;;  %1229 = vst [vmem:[%s2198_s5 + $0x40] sm:$0xff] %v1191_v19  ;;  %v1170_v55 = vadd.f32 %v1573_v57, %v1358_v16  ;;  %v1202_v42 = vadd.f32 %v1581_v37, %v1358_v16 }
 0x408   : > { %v1161_v27 = vpop.f32.mrf.mxu0  ;;  %v1193_v58 = vpop.f32.mrf.mxu1 }
 0x409   : > { %1224 = vst [vmem:[%s2198_s5 + $0x18] sm:$0xff] %v1170_v55  ;;  %1232 = vst [vmem:[%s2198_s5 + $0x58] sm:$0xff] %v1202_v42  ;;  %v1162_v44 = vadd.f32 %v1358_v16, %v1161_v27  ;;  %v1194_v63 = vadd.f32 %v1358_v16, %v1193_v58 }
 0x40a   : > { %v1576_v24 = vpop.f32.mrf.mxu0  ;;  %v1584_v5 = vpop.f32.mrf.mxu1 }
 0x40b   : > { %1222 = vst [vmem:[%s2198_s5 + $0x8] sm:$0xff] %v1162_v44  ;;  %1230 = vst [vmem:[%s2198_s5 + $0x48] sm:$0xff] %v1194_v63  ;;  %v1183_v6 = vadd.f32 %v1576_v24, %v1358_v16  ;;  %v1215_v0 = vadd.f32 %v1584_v5, %v1358_v16 }
 0x40c   : > { %v1174_v7 = vpop.f32.mrf.mxu0  ;;  %v1206_v61 = vpop.f32.mrf.mxu1 }
 0x40d   : > { %1227 = vst [vmem:[%s2198_s5 + $0x30] sm:$0xff] %v1183_v6  ;;  %1235 = vst [vmem:[%s2198_s5 + $0x70] sm:$0xff] %v1215_v0  ;;  %v1175_v8 = vadd.f32 %v1358_v16, %v1174_v7  ;;  %v1207_v9 = vadd.f32 %v1358_v16, %v1206_v61 }
 0x40e   : > { %v1577_v48 = vpop.f32.mrf.mxu0  ;;  %v1585_v50 = vpop.f32.mrf.mxu1 }
 0x40f   : > { %1225 = vst [vmem:[%s2198_s5 + $0x20] sm:$0xff] %v1175_v8  ;;  %1233 = vst [vmem:[%s2198_s5 + $0x60] sm:$0xff] %v1207_v9  ;;  %v1186_v10 = vadd.f32 %v1577_v48, %v1358_v16  ;;  %v1218_v11 = vadd.f32 %v1585_v50, %v1358_v16 }
 0x410   : > { %v1177_v41 = vpop.f32.mrf.mxu0  ;;  %v1209_v12 = vpop.f32.mrf.mxu1 }
 0x411   : > { %1228 = vst [vmem:[%s2198_s5 + $0x38] sm:$0xff] %v1186_v10  ;;  %1236 = vst [vmem:[%s2198_s5 + $0x78] sm:$0xff] %v1218_v11  ;;  %v1178_v31 = vadd.f32 %v1358_v16, %v1177_v41  ;;  %v1210_v13 = vadd.f32 %v1358_v16, %v1209_v12 }
 0x413   : > { %1226 = vst [vmem:[%s2198_s5 + $0x28] sm:$0xff] %v1178_v31  ;;  %1234 = vst [vmem:[%s2198_s5 + $0x68] sm:$0xff] %v1210_v13 }
 0x414 PF: > { %s15_s20 = sadd.s32 1, %s1721_s20   ;;  %s2199_s18 = smov %s1717_s19 }
 0x415   : > { %p12_p6 = scmp.ge.s32.totalorder %s15_s20, 4   ;;  %s2200_s19 = smov %s2202_s21 }
 0x417   :  { %14 = sbr.rel (!%p12_p6) target bundleno = 2 (0x2), region = 79 }

</bundles_post_ra>
